<compile_context>
chip_gen: v7x
topology: tpu7x:2x2x1
jax: 0.10.0
libtpu: 0.0.40
codegen_flags: <defaults>
</compile_context>

<pallas_src>
import jax
import jax.numpy as jnp
from jax.experimental import pallas as pl
from jax.experimental.pallas import tpu as pltpu

ALPHA = 0.9            # GCN2Conv alpha; theta=None, layer=None -> beta = 1.0
LANE = 128             # TPU lane width; channel dims are padded to this
MXU_DTYPE = jnp.bfloat16  # MXU-native operand dtype (v5e/v6e/v7x); accumulation stays f32


def _round_up(n, m):
    return (n + m - 1) // m * m


def _interactions_kernel(x_ref, a_ref, w0_ref, b0_ref, wconv_ref, out_ref):
    """One graph per grid step; all operands VMEM-resident, channels lane-dense.

    x_ref:     [1, N, Fp]        node features (zero-padded channels)
    a_ref:     [1, N, N]         dense symmetric-normalized adjacency (A[dst, src])
    w0_ref:    [Fp, Cp]          lin0 weight (transposed vs. torch Linear, zero-padded)
    b0_ref:    [1, Cp]           lin0 bias (zero-padded)
    wconv_ref: [n_conv, Cp, Cp]  per-layer GCN2Conv weight1 (zero-padded)
    out_ref:   [1, N, Cp]
    """
    x_in = x_ref[0]          # [N, Fp] f32
    a = a_ref[0]             # [N, N]  f32

    # lin0 + softplus.  MXU operands bf16, f32 accumulation; VPU/EUP work in f32.
    x = jnp.dot(x_in.astype(MXU_DTYPE), w0_ref[...].astype(MXU_DTYPE),
                preferred_element_type=jnp.float32) + b0_ref[...]
    x = jax.nn.softplus(x)

    # Hoist loop-invariant mixes out of the unrolled conv loop.
    a_scaled = ((1.0 - ALPHA) * a).astype(MXU_DTYPE)   # (1-alpha) * A   (bf16 MXU operand)
    ax = ALPHA * x                                     # alpha * x_0     (f32)

    out = x
    n_conv = wconv_ref.shape[0]
    for i in range(n_conv):  # static unroll over conv layers
        # GCNII propagation: (1-alpha) * A @ out + alpha * x_0   (f32 accumulation)
        h = jnp.dot(a_scaled, out.astype(MXU_DTYPE),
                    preferred_element_type=jnp.float32) + ax
        # beta == 1.0 and shared_weights=True  ->  conv output is just h @ W_i
        conv_out = jnp.dot(h.astype(MXU_DTYPE), wconv_ref[i].astype(MXU_DTYPE),
                           preferred_element_type=jnp.float32)
        out = out + jnp.maximum(conv_out, 0.0)  # residual + ReLU, f32

    out_ref[0] = out  # Cp == multiple of 128 -> unmasked lane-dense store


def gcn_norm_dense(edge_index, edge_weight, num_nodes):
    """PyG gcn_norm with add_self_loops=False, returned as a dense [N, N] matrix
    such that (P @ x) == A @ x (aggregation at target node edge_index[1])."""
    row, col = edge_index[0], edge_index[1]
    deg = jnp.zeros((num_nodes,), jnp.float32).at[col].add(edge_weight)
    dinv = jnp.where(deg > 0, jax.lax.rsqrt(deg), 0.0)
    norm = dinv[row] * edge_weight * dinv[col]
    a = jnp.zeros((num_nodes, num_nodes), jnp.float32).at[col, row].add(norm)
    return a


def interactions_forward_batched(x, edge_index, edge_weight, params, edge_attr=None):
    """Batched forward: x [B, N, F_in], edge_index [B, 2, E], edge_weight [B, E]."""
    del edge_attr  # accepted (as in the PyTorch forward signature) but unused
    b, n, f_in = x.shape
    c = params["w0"].shape[1]
    n_conv = params["wconv"].shape[0]
    fp = _round_up(f_in, LANE)
    cp = _round_up(c, LANE)

    # Dense normalized adjacency per graph (PyG gcn_norm, no self loops).
    # TODO(synk): for sparse production graphs (E << N^2) replace the densify +
    # dense A@out with a CSR SpMM kernel (PrefetchScalarGridSpec row gather).
    a = jax.vmap(gcn_norm_dense, in_axes=(0, 0, None))(edge_index, edge_weight, n)

    # Zero-pad channel dims to the 128-lane boundary.  Padded rows/cols of the
    # weights are zero, so padded channels never leak into the real C channels.
    x_p = jnp.zeros((b, n, fp), jnp.float32).at[:, :, :f_in].set(x)
    w0_p = jnp.zeros((fp, cp), jnp.float32).at[:f_in, :c].set(params["w0"])
    b0_p = jnp.zeros((1, cp), jnp.float32).at[:, :c].set(params["b0"])
    wconv_p = jnp.zeros((n_conv, cp, cp), jnp.float32).at[:, :c, :c].set(params["wconv"])

    flops = b * (2 * n * fp * cp + n_conv * (2 * n * n * cp + 2 * n * cp * cp))
    bytes_accessed = 4 * (x_p.size + a.size + w0_p.size + b0_p.size
                          + wconv_p.size + b * n * cp)

    out_p = pl.pallas_call(
        _interactions_kernel,
        out_shape=jax.ShapeDtypeStruct((b, n, cp), jnp.float32),
        grid=(b,),
        in_specs=[
            pl.BlockSpec((1, n, fp), lambda g: (g, 0, 0)),        # per-graph features
            pl.BlockSpec((1, n, n), lambda g: (g, 0, 0)),         # per-graph adjacency
            pl.BlockSpec((fp, cp), lambda g: (0, 0)),             # shared lin0 weight
            pl.BlockSpec((1, cp), lambda g: (0, 0)),              # shared lin0 bias
            pl.BlockSpec((n_conv, cp, cp), lambda g: (0, 0, 0)),  # shared conv weights
        ],
        out_specs=pl.BlockSpec((1, n, cp), lambda g: (g, 0, 0)),
        compiler_params=pltpu.CompilerParams(
            dimension_semantics=("parallel",)),
        cost_estimate=pl.CostEstimate(
            flops=int(flops),
            transcendentals=int(b * n * cp),
            bytes_accessed=int(bytes_accessed)),
    )(x_p, a, w0_p, b0_p, wconv_p)

    # TODO(synk): for graphs where dense A (4*N^2 B f32 / 2*N^2 B bf16) exceeds VMEM
    # (N ~ 2-3k, tighter on v7x's 64 MiB), keep A in HBM (memory_space=pl.ANY) and
    # stream row tiles per layer instead of loading it whole.
    return out_p[:, :, :c]


def interactions_forward(x, edge_index, edge_weight, params, edge_attr=None):
    """Single-graph convenience wrapper: x [N, F_in], edge_index [2, E]."""
    out = interactions_forward_batched(x[None], edge_index[None], edge_weight[None],
                                       params, edge_attr)
    return out[0]


def init_params(key, f_in, c, n_conv):
    k_w0, k_wc = jax.random.split(key, 2)
    w0 = jax.random.normal(k_w0, (f_in, c), jnp.float32) / jnp.sqrt(jnp.float32(f_in))
    b0 = jnp.zeros((1, c), jnp.float32)
    wconv = jax.random.normal(k_wc, (n_conv, c, c), jnp.float32) / jnp.sqrt(jnp.float32(c))
    return {"w0": w0, "b0": b0, "wconv": wconv}


if __name__ == "__main__":
    key = jax.random.PRNGKey(0)
    B = 2             # graphs per batch (grid axis, "parallel")
    N_NODES = 16      # nodes per graph
    F_IN = 32         # num_node_hidden_channels (padded to 128 inside the wrapper)
    C = 32            # num_node_interaction_channels (padded to 128 inside the wrapper)
    N_EDGES = 48
    N_CONV = 2

    k_x, k_src, k_dst, k_ew, k_par = jax.random.split(key, 5)
    x = jax.random.normal(k_x, (B, N_NODES, F_IN), jnp.float32)
    src = jax.random.randint(k_src, (B, N_EDGES), 0, N_NODES)
    dst = jax.random.randint(k_dst, (B, N_EDGES), 0, N_NODES)
    edge_index = jnp.stack([src, dst], axis=1)                         # [B, 2, E]
    edge_weight = jax.random.uniform(k_ew, (B, N_EDGES), jnp.float32, 0.1, 1.0)
    edge_attr = jnp.zeros((B, N_EDGES, 4), jnp.float32)                # unused by forward

    params = init_params(k_par, F_IN, C, N_CONV)

    out = interactions_forward_batched(x, edge_index, edge_weight, params, edge_attr)
    jax.block_until_ready(out)
    assert out.shape == (B, N_NODES, C)
    assert bool(jnp.all(jnp.isfinite(out)))
    print("KERNEL_OK")
</pallas_src>

<mosaic_0001>
module attributes {stable_mosaic.version = 11 : i64} {
  func.func @_interactions_kernel(%arg0: i32, %arg1: memref<1x16x128xf32, #tpu.memory_space<vmem>>, %arg2: memref<1x16x16xf32, #tpu.memory_space<vmem>>, %arg3: memref<128x128xf32, #tpu.memory_space<vmem>>, %arg4: memref<1x128xf32, #tpu.memory_space<vmem>>, %arg5: memref<2x128x128xf32, #tpu.memory_space<vmem>>, %arg6: memref<1x16x128xf32, #tpu.memory_space<vmem>>) attributes {dimension_semantics = [#tpu.dimension_semantics<parallel>], iteration_bounds = array<i64: 2>, scalar_prefetch = 0 : i64, scratch_operands = 0 : i64, tpu.core_type = #tpu.core_type<tc>, window_params = [{transform_indices = @transform_0, window_bounds = array<i64: 1, 16, 128>}, {transform_indices = @transform_1, window_bounds = array<i64: 1, 16, 16>}, {pipeline_mode = #tpu.pipeline_mode<synchronous>, transform_indices = @transform_2, window_bounds = array<i64: 128, 128>}, {pipeline_mode = #tpu.pipeline_mode<synchronous>, transform_indices = @transform_3, window_bounds = array<i64: 1, 128>}, {pipeline_mode = #tpu.pipeline_mode<synchronous>, transform_indices = @transform_4, window_bounds = array<i64: 2, 128, 128>}, {transform_indices = @transform_5, window_bounds = array<i64: 1, 16, 128>}]} {
    %c0 = arith.constant 0 : index
    %c0_0 = arith.constant 0 : index
    %c0_1 = arith.constant 0 : index
    %0 = vector.load %arg1[%c0, %c0_0, %c0_1] : memref<1x16x128xf32, #tpu.memory_space<vmem>>, vector<1x16x128xf32>
    %1 = vector.shape_cast %0 : vector<1x16x128xf32> to vector<16x128xf32>
    %c0_2 = arith.constant 0 : index
    %c0_3 = arith.constant 0 : index
    %c0_4 = arith.constant 0 : index
    %2 = vector.load %arg2[%c0_2, %c0_3, %c0_4] : memref<1x16x16xf32, #tpu.memory_space<vmem>>, vector<1x16x16xf32>
    %3 = vector.shape_cast %2 : vector<1x16x16xf32> to vector<16x16xf32>
    %4 = arith.truncf %1 : vector<16x128xf32> to vector<16x128xbf16>
    %c0_5 = arith.constant 0 : index
    %c0_6 = arith.constant 0 : index
    %5 = vector.load %arg3[%c0_5, %c0_6] : memref<128x128xf32, #tpu.memory_space<vmem>>, vector<128x128xf32>
    %6 = arith.truncf %5 : vector<128x128xf32> to vector<128x128xbf16>
    %cst = arith.constant dense<0.000000e+00> : vector<16x128xf32>
    %7 = tpu.matmul %4, %6, %cst {dimension_numbers = #tpu.dot_dimension_numbers<[1], [0], [0], [1], [0, 0, 1, 1], [], []>} : vector<16x128xbf16>, vector<128x128xbf16>, vector<16x128xf32> -> vector<16x128xf32>
    %c0_7 = arith.constant 0 : index
    %c0_8 = arith.constant 0 : index
    %8 = vector.load %arg4[%c0_7, %c0_8] : memref<1x128xf32, #tpu.memory_space<vmem>>, vector<1x128xf32>
    %9 = vector.broadcast %8 : vector<1x128xf32> to vector<16x128xf32>
    %10 = arith.addf %7, %9 : vector<16x128xf32>
    %cst_9 = arith.constant 0.000000e+00 : f32
    %11 = vector.broadcast %cst_9 : f32 to vector<16x128xf32>
    %12 = arith.maximumf %10, %11 : vector<16x128xf32>
    %13 = vector.broadcast %cst_9 : f32 to vector<16x128xf32>
    %14 = arith.subf %10, %13 : vector<16x128xf32>
    %15 = arith.cmpf one, %14, %14 : vector<16x128xf32>
    %16 = vector.broadcast %cst_9 : f32 to vector<16x128xf32>
    %17 = arith.addf %10, %16 : vector<16x128xf32>
    %18 = math.absf %14 : vector<16x128xf32>
    %cst_10 = arith.constant 0.000000e+00 : f32
    %19 = vector.broadcast %cst_10 : f32 to vector<16x128xf32>
    %20 = arith.subf %19, %18 : vector<16x128xf32>
    %21 = math.exp %20 : vector<16x128xf32>
    %22 = math.log1p %21 : vector<16x128xf32>
    %23 = arith.addf %12, %22 : vector<16x128xf32>
    %24 = arith.select %15, %17, %23 : vector<16x128xi1>, vector<16x128xf32>
    %cst_11 = arith.constant 1.000000e-01 : f32
    %25 = vector.broadcast %cst_11 : f32 to vector<16x16xf32>
    %26 = arith.mulf %25, %3 : vector<16x16xf32>
    %27 = arith.truncf %26 : vector<16x16xf32> to vector<16x16xbf16>
    %cst_12 = arith.constant 0.899999976 : f32
    %28 = vector.broadcast %cst_12 : f32 to vector<16x128xf32>
    %29 = arith.mulf %28, %24 : vector<16x128xf32>
    %30 = arith.truncf %24 : vector<16x128xf32> to vector<16x128xbf16>
    %cst_13 = arith.constant dense<0.000000e+00> : vector<16x128xf32>
    %31 = tpu.matmul %27, %30, %cst_13 {dimension_numbers = #tpu.dot_dimension_numbers<[1], [0], [0], [1], [0, 0, 1, 1], [], []>} : vector<16x16xbf16>, vector<16x128xbf16>, vector<16x128xf32> -> vector<16x128xf32>
    %32 = arith.addf %31, %29 : vector<16x128xf32>
    %33 = arith.truncf %32 : vector<16x128xf32> to vector<16x128xbf16>
    %c0_14 = arith.constant 0 : index
    %c0_15 = arith.constant 0 : index
    %c0_16 = arith.constant 0 : index
    %34 = vector.load %arg5[%c0_14, %c0_15, %c0_16] : memref<2x128x128xf32, #tpu.memory_space<vmem>>, vector<1x128x128xf32>
    %35 = vector.shape_cast %34 : vector<1x128x128xf32> to vector<128x128xf32>
    %36 = arith.truncf %35 : vector<128x128xf32> to vector<128x128xbf16>
    %cst_17 = arith.constant dense<0.000000e+00> : vector<16x128xf32>
    %37 = tpu.matmul %33, %36, %cst_17 {dimension_numbers = #tpu.dot_dimension_numbers<[1], [0], [0], [1], [0, 0, 1, 1], [], []>} : vector<16x128xbf16>, vector<128x128xbf16>, vector<16x128xf32> -> vector<16x128xf32>
    %cst_18 = arith.constant 0.000000e+00 : f32
    %38 = vector.broadcast %cst_18 : f32 to vector<16x128xf32>
    %39 = arith.maximumf %37, %38 : vector<16x128xf32>
    %40 = arith.addf %24, %39 : vector<16x128xf32>
    %41 = arith.truncf %40 : vector<16x128xf32> to vector<16x128xbf16>
    %cst_19 = arith.constant dense<0.000000e+00> : vector<16x128xf32>
    %42 = tpu.matmul %27, %41, %cst_19 {dimension_numbers = #tpu.dot_dimension_numbers<[1], [0], [0], [1], [0, 0, 1, 1], [], []>} : vector<16x16xbf16>, vector<16x128xbf16>, vector<16x128xf32> -> vector<16x128xf32>
    %43 = arith.addf %42, %29 : vector<16x128xf32>
    %44 = arith.truncf %43 : vector<16x128xf32> to vector<16x128xbf16>
    %c1 = arith.constant 1 : index
    %c0_20 = arith.constant 0 : index
    %c0_21 = arith.constant 0 : index
    %45 = vector.load %arg5[%c1, %c0_20, %c0_21] : memref<2x128x128xf32, #tpu.memory_space<vmem>>, vector<1x128x128xf32>
    %46 = vector.shape_cast %45 : vector<1x128x128xf32> to vector<128x128xf32>
    %47 = arith.truncf %46 : vector<128x128xf32> to vector<128x128xbf16>
    %cst_22 = arith.constant dense<0.000000e+00> : vector<16x128xf32>
    %48 = tpu.matmul %44, %47, %cst_22 {dimension_numbers = #tpu.dot_dimension_numbers<[1], [0], [0], [1], [0, 0, 1, 1], [], []>} : vector<16x128xbf16>, vector<128x128xbf16>, vector<16x128xf32> -> vector<16x128xf32>
    %cst_23 = arith.constant 0.000000e+00 : f32
    %49 = vector.broadcast %cst_23 : f32 to vector<16x128xf32>
    %50 = arith.maximumf %48, %49 : vector<16x128xf32>
    %51 = arith.addf %40, %50 : vector<16x128xf32>
    %c0_24 = arith.constant 0 : index
    %c0_25 = arith.constant 0 : index
    %c0_26 = arith.constant 0 : index
    %52 = vector.load %arg6[%c0_24, %c0_25, %c0_26] : memref<1x16x128xf32, #tpu.memory_space<vmem>>, vector<1x16x128xf32>
    %53 = vector.shape_cast %52 : vector<1x16x128xf32> to vector<16x128xf32>
    %54 = vector.shape_cast %51 : vector<16x128xf32> to vector<1x16x128xf32>
    tpu.vector_store %arg6[%c0_24, %c0_25, %c0_26], %54 {strides = array<i32>} : memref<1x16x128xf32, #tpu.memory_space<vmem>>, vector<1x16x128xf32>,
    return
  }
  func.func @transform_0(%arg0: i32) -> (i32, i32, i32) {
    %c0_i32 = arith.constant 0 : i32
    %c0_i32_0 = arith.constant 0 : i32
    %c0_i32_1 = arith.constant 0 : i32
    return %arg0, %c0_i32, %c0_i32_0 : i32, i32, i32
  }
  func.func @transform_1(%arg0: i32) -> (i32, i32, i32) {
    %c0_i32 = arith.constant 0 : i32
    %c0_i32_0 = arith.constant 0 : i32
    %c0_i32_1 = arith.constant 0 : i32
    return %arg0, %c0_i32, %c0_i32_0 : i32, i32, i32
  }
  func.func @transform_2(%arg0: i32) -> (i32, i32) {
    %c0_i32 = arith.constant 0 : i32
    %c0_i32_0 = arith.constant 0 : i32
    %c0_i32_1 = arith.constant 0 : i32
    return %c0_i32, %c0_i32_0 : i32, i32
  }
  func.func @transform_3(%arg0: i32) -> (i32, i32) {
    %c0_i32 = arith.constant 0 : i32
    %c0_i32_0 = arith.constant 0 : i32
    %c0_i32_1 = arith.constant 0 : i32
    return %c0_i32, %c0_i32_0 : i32, i32
  }
  func.func @transform_4(%arg0: i32) -> (i32, i32, i32) {
    %c0_i32 = arith.constant 0 : i32
    %c0_i32_0 = arith.constant 0 : i32
    %c0_i32_1 = arith.constant 0 : i32
    %c0_i32_2 = arith.constant 0 : i32
    return %c0_i32, %c0_i32_0, %c0_i32_1 : i32, i32, i32
  }
  func.func @transform_5(%arg0: i32) -> (i32, i32, i32) {
    %c0_i32 = arith.constant 0 : i32
    %c0_i32_0 = arith.constant 0 : i32
    %c0_i32_1 = arith.constant 0 : i32
    return %arg0, %c0_i32, %c0_i32_0 : i32, i32, i32
  }
}

</mosaic_0001>

<bundles_post_ra>
// kernel: tpu_custom_call.1
= control target key start
LH: loop header
LB: loop body
LE: loop exit
PB: predicated region body
PF: predicated region fallthrough
CT: control target
= control target key end

     0   :  { %s1609_s0 = inlined_call_operand.hbm [shape: f32[2,16,128], index: 0, kind: input, shape index: {}]   ;;  %s1610_s1 = inlined_call_operand.hbm [shape: f32[2,16,16], index: 1, kind: input, shape index: {}]   ;;  %s1611_s2 = inlined_call_operand.hbm [shape: f32[128,128], index: 2, kind: input, shape index: {}]   ;;  %s1612_s3 = inlined_call_operand.vmem [shape: f32[1,128], index: 3, kind: input, shape index: {}]   ;;  %s1613_s4 = inlined_call_operand.hbm [shape: f32[2,128,128], index: 4, kind: input, shape index: {}]   ;;  %s1614_s5 = inlined_call_operand.hbm [shape: f32[2,16,128], index: 5, kind: output, shape index: {}]  }
   0x1   :  { %1622 = sst [smem:[#allocation16_spill]] %s1609_s0 }
   0x2   :  { %1623 = sst [smem:[#allocation17_spill]] %s1611_s2 }
   0x3   :  { %10 = vsyncpa [#allocation3], 0 }
   0x4   :  { %12 = vsyncpa [#allocation3 + $0x1], 0 }
   0x5   :  { %13 = vsyncpa [#allocation6], 0 }
   0x6   :  { %15 = vsyncpa [#allocation6 + $0x1], 0 }
   0x7   :  { %16 = vsyncpa [#allocation9], 0 }
   0x8   :  { %17 = vsyncpa [#allocation4], 0 }
   0x9   :  { %19 = vsyncpa [#allocation4 + $0x1], 0  ;;  %s1245_s18 = smov 0   ;;  %s1247_s19 = smov 0  }
   0xa   :  { %s1249_s20 = smov 0   ;;  %s1251_s21 = smov 0  }
   0xb LB: > { %s1266_s22 = sadd.s32 4294967295, %s1202_s21   ;;  %s791_s23 = sadd.s32 4294967294, %s1202_s21   ;;  %s1202_s21 = sphi %s1251_s21, %s1646_s21   ;;  %s1198_s20 = sphi %s1249_s20, %s1645_s20   ;;  %s1194_s19 = sphi %s1247_s19, %s1644_s19   ;;  %s1190_s18 = sphi %s1245_s18, %s1643_s18  }
   0xc   : > { %p45_p0 = scmp.ne.s32.totalorder %s1194_s19, %s1190_s18  ;;  %p1615_p1 = scmp.eq.s32.totalorder %s1266_s22, 0 }
   0xd   : > { %p164_p3 = scmp.eq.s32.totalorder %s791_s23, 1  ;;  %p792_p5 = scmp.ge.s32.totalorder %s1202_s21, 1 }
   0xe   : > { %p1275_p4 = por %p1615_p1, %p45_p0  ;;  %p171_p7 = scmp.lt.s32.totalorder %s1202_s21, 3 }
   0xf   : > { %p1280_p6 = por %p164_p3, %p45_p0  ;;  %s1204_s27 = smov [#allocation7]  }
  0x10   : > { %s1624_s24 = scalar_select %p1275_p4, 1, 0 }
  0x11   : > { %s1625_s25 = scalar_select %p1280_p6, 1, 0 }
  0x12   : > { %p1285_p8 = pnand %p792_p5, %p171_p7  ;;  %s183_s28 = sshll.u32 %s1204_s27, 4  ;;  %s1289_s28 = int_to_ptr.vmem [resolvable:$true] %s183_s28 }
  0x13   : > { %s1205_s30 = smov [#allocation8]   ;;  %s1628_s2 = sld [smem:[#allocation17_spill]] }
  0x14   : > { %p936_p9 = pneg %p1285_p8  ;;  %s199_s6 = sshll.u32 %s1205_s30, 4  ;;  %s1300_s6 = int_to_ptr.vmem [resolvable:$true] %s199_s6 }
  0x16   : > { %p1296_p11 = pnand %p936_p9, %p1615_p1 }
  0x18   : > { %p1010_p13 = pneg %p1296_p11 }
  0x19   : > { %s1008_s9 = scalar_lea.hbm %s1628_s2, 2048 }
  0x1a   : > { %p1009_p12 = scmp.ne.s32.totalorder %s1628_s2, %s1008_s9  ;;  %p1015_p5 = scmp.lt.u32.totalorder %s1008_s9, %s1628_s2 }
  0x1c   : > { %p1011_p0 = pnand %p1010_p13, %p1009_p12 }
  0x1e   : > { %p1012_p3 = pneg %p1011_p0 }
  0x20   : > { %p1017_p7 = pnand %p1015_p5, %p1012_p3 }
  0x22   : > { %1020 = shalt.err (!%p1017_p7)
}
  0x23   : > { %s1021_s14 = scalar_lea.vmem %s1289_s28, 2048  ;;  %p1029_p2 = scmp.lt.s32.totalorder %s1289_s28, %s1289_s28 }
  0x24   : > { %p1022_p9 = scmp.ne.s32.totalorder %s1289_s28, %s1021_s14  ;;  %p1030_p12 = scmp.lt.s32.totalorder %s1021_s14, %s1021_s14 }
  0x26   : > { %p1024_p10 = pnand %p1022_p9, %p1010_p13  ;;  %p1031_p0 = por %p1030_p12, %p1029_p2 }
  0x28   : > { %p1025_p1 = pneg %p1024_p10 }
  0x2a   : > { %p1032_p6 = pnand %p1031_p0, %p1025_p1 }
  0x2c   : > { %1035 = shalt.err (!%p1032_p6)
}
  0x2d   : > { %s1616_s15 = smov 128   ;;  %s1618_s16 = smov 8  }
  0x2e   : > { %939 = dma.hbm_to_vmem [thread:$0]  (!%p1296_p11), %s1628_s2, 2048, %s1289_s28, [#allocation6], %s1616_s15, %s1616_s15, %s1618_s16  }
  0x2f   : > { %s1036_s7 = scalar_lea.hbm %s1613_s4, 4096 }
  0x30   : > { %p1037_p1 = scmp.ne.s32.totalorder %s1613_s4, %s1036_s7  ;;  %p1043_p10 = scmp.lt.u32.totalorder %s1036_s7, %s1613_s4 }
  0x32   : > { %p1039_p2 = pnand %p1037_p1, %p1010_p13 }
  0x34   : > { %p1040_p6 = pneg %p1039_p2 }
  0x36   : > { %p1045_p3 = pnand %p1043_p10, %p1040_p6 }
  0x38   : > { %1048 = shalt.err (!%p1045_p3)
}
  0x39   : > { %s1049_s28 = scalar_lea.vmem %s1300_s6, 4096  ;;  %p1057_p12 = scmp.lt.s32.totalorder %s1300_s6, %s1300_s6 }
  0x3a   : > { %p1050_p5 = scmp.ne.s32.totalorder %s1300_s6, %s1049_s28  ;;  %p1058_p0 = scmp.lt.s32.totalorder %s1049_s28, %s1049_s28 }
  0x3c   : > { %p1052_p7 = pnand %p1050_p5, %p1010_p13  ;;  %p1059_p1 = por %p1058_p0, %p1057_p12 }
  0x3e   : > { %p1053_p9 = pneg %p1052_p7 }
  0x40   : > { %p1060_p2 = pnand %p1059_p1, %p1053_p9 }
  0x42   : > { %1063 = shalt.err (!%p1060_p2)
}
  0x43   : > { %942 = dma.hbm_to_vmem [thread:$0]  (!%p1296_p11), %s1613_s4, 4096, %s1300_s6, [#allocation9], %s1616_s15, %s1616_s15, %s1618_s16  }
  0x44   : > { %s1361_s29 = sadd.s32 1, %s1202_s21   ;;  %s32_s14 = sadd.s32 1, %s1198_s20 }
  0x45   : > { %s29_s17 = ssub.s32 %s1202_s21, %s1361_s29  ;;  %p39_p13 = scmp.ne.s32.totalorder %s1198_s20, %s1194_s19 }
  0x46   : > { %p30_p6 = scmp.eq.s32.totalorder %s29_s17, 0  ;;  %p40_p10 = scmp.eq.s32.totalorder %s1202_s21, 0 }
  0x47   : > { %p1629_p3 = scmp.eq.s32.totalorder %s1266_s22, 1  ;;  %p956_p7 = scmp.lt.s32.totalorder %s1202_s21, 2 }
  0x48   : > { %s1377_s27 = scalar_select %p30_p6, %s1198_s20, %s32_s14  }
  0x49   : > { %p1371_p5 = por %p1629_p3, %p39_p13  ;;  %p41_p9 = por %p40_p10, %p39_p13 }
  0x4a   : > { %s213_s30 = sand.u32 1, %s1198_s20   ;;  %s816_s6 = sshll.u32 %s1202_s21, 8 }
  0x4b   : > { %s1630_s23 = scalar_select %p1371_p5, 1, 0 }
  0x4c   : > { %s796_s7 = sshll.u32 %s213_s30, 4  ;;  %s1631_s0 = sld [smem:[#allocation16_spill]] }
  0x4d   : > { %s217_s11 = scalar_lea.vmem [#allocation2], %s796_s7  ;;  %p1388_p11 = pnand %p956_p7, %p41_p9 }
  0x4e   : > { %s224_s28 = sshll.u32 %s217_s11, 4  ;;  %s1395_s17 = scalar_lea.hbm %s1610_s1, %s816_s6  ;;  %s1386_s28 = int_to_ptr.vmem [resolvable:$true] %s224_s28 }
  0x4f   : > { %s238_s8 = scalar_lea.vmem [#allocation5], %s796_s7  ;;  %s1399_s15 = scalar_lea.sflag [#allocation3], %s213_s30 }
  0x50   : > { %s1397_s9 = sshll.u32 %s238_s8, 4  ;;  %p1066_p0 = pneg %p1388_p11  ;;  %s1431_s9 = int_to_ptr.vmem [resolvable:$true] %s1397_s9 }
  0x52   : > { %s1384_s10 = scalar_lea.hbm %s1631_s0, %s816_s6  ;;  %s1069_s13 = scalar_lea.hbm %s1631_s0, 512 }
  0x53   : > { %s1064_s11 = scalar_lea.hbm %s1384_s10, 256  ;;  %p1070_p13 = scmp.lt.u32.totalorder %s1384_s10, %s1631_s0 }
  0x54   : > { %p1065_p12 = scmp.ne.s32.totalorder %s1384_s10, %s1064_s11  ;;  %p1071_p6 = scmp.lt.u32.totalorder %s1069_s13, %s1064_s11 }
  0x55   : > { %p1073_p3 = scmp.lt.u32.totalorder %s1064_s11, %s1384_s10 }
  0x56   : > { %p1067_p1 = pnand %p1066_p0, %p1065_p12  ;;  %p1072_p10 = por %p1071_p6, %p1070_p13 }
  0x58   : > { %p1068_p2 = pneg %p1067_p1  ;;  %p1074_p7 = por %p1073_p3, %p1072_p10 }
  0x5a   : > { %p1075_p9 = pnand %p1074_p7, %p1068_p2 }
  0x5c   : > { %1078 = shalt.err (!%p1075_p9)
}
  0x5d   : > { %s1079_s30 = scalar_lea.vmem %s1386_s28, 256  ;;  %s1208_s2 = smov [#allocation2]  }
  0x5e   : > { %p1080_p12 = scmp.ne.s32.totalorder %s1386_s28, %s1079_s30  ;;  %s1084_s16 = sshll.u32 %s1208_s2, 4  ;;  %s1085_s16 = int_to_ptr.vmem [resolvable:$false] %s1084_s16 }
  0x5f   : > { %s1086_s7 = scalar_lea.vmem %s1085_s16, 512  ;;  %p1087_p4 = scmp.lt.s32.totalorder %s1386_s28, %s1085_s16 }
  0x60   : > { %p1082_p1 = pnand %p1080_p12, %p1066_p0  ;;  %p1088_p13 = scmp.lt.s32.totalorder %s1086_s7, %s1079_s30 }
  0x62   : > { %p1083_p5 = pneg %p1082_p1  ;;  %p1089_p6 = por %p1088_p13, %p1087_p4 }
  0x64   : > { %p1090_p10 = pnand %p1089_p6, %p1083_p5 }
  0x66   : > { %1093 = shalt.err (!%p1090_p10)
}
  0x67   : > { %s1633_s8 = smov 8   ;;  %s1634_s11 = smov 128  }
  0x68   : > { %946 = dma.hbm_to_vmem [thread:$0]  (!%p1388_p11), %s1384_s10, 256, %s1386_s28, %s1399_s15, %s1634_s11, %s1634_s11, %s1633_s8  }
  0x69   : > { %s234_s13 = sand.u32 1, %s1202_s21   ;;  %s1094_s6 = scalar_lea.hbm %s1395_s17, 256 }
  0x6a   : > { %s1434_s14 = scalar_lea.sflag [#allocation6], %s234_s13  ;;  %p1095_p4 = scmp.ne.s32.totalorder %s1395_s17, %s1094_s6 }
  0x6b   : > { %s1099_s16 = scalar_lea.hbm %s1610_s1, 512  ;;  %p1100_p3 = scmp.lt.u32.totalorder %s1395_s17, %s1610_s1 }
  0x6c   : > { %p1097_p5 = pnand %p1095_p4, %p1066_p0  ;;  %p1101_p7 = scmp.lt.u32.totalorder %s1099_s16, %s1094_s6 }
  0x6d   : > { %p1103_p12 = scmp.lt.u32.totalorder %s1094_s6, %s1395_s17 }
  0x6e   : > { %p1098_p2 = pneg %p1097_p5  ;;  %p1102_p9 = por %p1101_p7, %p1100_p3 }
  0x70   : > { %p1104_p1 = por %p1103_p12, %p1102_p9 }
  0x72   : > { %p1105_p13 = pnand %p1104_p1, %p1098_p2 }
  0x74   : > { %1108 = shalt.err (!%p1105_p13)
}
  0x75   : > { %s1109_s15 = scalar_lea.vmem %s1431_s9, 256  ;;  %s1209_s10 = smov [#allocation5]  }
  0x76   : > { %p1110_p6 = scmp.ne.s32.totalorder %s1431_s9, %s1109_s15  ;;  %s1114_s28 = sshll.u32 %s1209_s10, 4  ;;  %s1115_s28 = int_to_ptr.vmem [resolvable:$false] %s1114_s28 }
  0x77   : > { %s1116_s0 = scalar_lea.vmem %s1115_s28, 512  ;;  %p1117_p5 = scmp.lt.s32.totalorder %s1431_s9, %s1115_s28 }
  0x78   : > { %p1112_p10 = pnand %p1110_p6, %p1066_p0  ;;  %p1118_p3 = scmp.lt.s32.totalorder %s1116_s0, %s1109_s15 }
  0x7a   : > { %p1113_p4 = pneg %p1112_p10  ;;  %p1119_p7 = por %p1118_p3, %p1117_p5 }
  0x7c   : > { %p1120_p9 = pnand %p1119_p7, %p1113_p4 }
  0x7e   : > { %1123 = shalt.err (!%p1120_p9)
}
  0x7f   : > { %949 = dma.hbm_to_vmem [thread:$0]  (!%p1388_p11), %s1395_s17, 256, %s1431_s9, %s1434_s14, %s1634_s11, %s1634_s11, %s1633_s8  }
  0x80   : > { %257 = sbr.rel (%p1285_p8) target bundleno = 1328 (0x530), region = 40  ;;  %s1466_s13 = sand.u32 (!%p1285_p8), 1, %s1194_s19  }
  0x81   : > { %s1469_s6 = sshll.u32 (!%p1285_p8), %s1466_s13, 4  ;;  %s260_s12 = scalar_lea.sflag (!%p1285_p8), [#allocation3], %s1466_s13 }
  0x82   : > { %s263_s30 = scalar_lea.vmem (!%p1285_p8), [#allocation2], %s1469_s6  ;;  %p1635_p0 = scmp.ne.s32.totalorder (!%p1285_p8), %s1624_s24, 0 }
  0x87   : > { %1169 = dma.done.wait (%p1635_p0), %s260_s12, 256  }
  0x88   : > { %1171 = vsyncadd (%p1635_p0), %s260_s12, 4294967040  ;;  %s268_s26 = sand.u32 1, %s1266_s22   ;;  %s272_s9 = scalar_lea.vmem [#allocation5], %s1469_s6 }
  0x89   : > { %s269_s17 = scalar_lea.sflag [#allocation6], %s268_s26 }
  0x8a   : > { %1173 = dma.done.wait (%p1635_p0), %s269_s17, 256  }
  0x8b   : > { %1175 = vsyncadd (%p1635_p0), %s269_s17, 4294967040  ;;  %p1636_p8 = scmp.eq.s32.totalorder %s1266_s22, 0 }
  0x8d   : > { %1177 = dma.done.wait (%p1636_p8), [#allocation6], 2048   ;;  %p1637_p11 = pmov %p1636_p8 }
  0x8e   : > { %p1638_p2 = pmov %p1636_p8 }
  0x8f   : > { %1179 = vsyncadd (%p1637_p11), [#allocation6], 4294965248 }
  0x90   : > { %1181 = dma.done.wait (%p1638_p2), [#allocation9], 4096   ;;  %p1639_p12 = pmov %p1638_p2 }
  0x91   : > { %v1210_v0 = vmov 0.0   ;;  %vm1211_vm0 = vmmov 0   ;;  %v318_v1 = vld [vmem:[#allocation7] sm:$0xff]  ;;  %v319_v2 = vld [vmem:[#allocation7 + $0x8] sm:$0xff]  ;;  %v320_v3 = vld [vmem:[#allocation7 + $0x10] sm:$0xff]  ;;  %vm432_vm5 = vcmask 130048  }
  0x92   : > { %1183 = vsyncadd (%p1639_p12), [#allocation9], 4294963200  ;;  %850 = vmatprep.subr.bf16.mxu0 %v1210_v0  ;;  %866 = vmatprep.mubr.msk.bf16.mxu0 %vm1211_vm0, %v1210_v0  ;;  %v334_v4 = vpack.c.bf16 %v319_v2, %v318_v1  ;;  %v321_v5 = vld [vmem:[#allocation7 + $0x18] sm:$0xff]  ;;  %v322_v7 = vld [vmem:[#allocation7 + $0x20] sm:$0xff]  ;;  %s311_s11 = scalar_lea.vmem [#allocation10], %s1469_s6  ;;  %s818_s2 = sshll.u32 %s1266_s22, 8 }
  0x93   : > { %876 = vmatprep.subr.bf16.mxu1 %v1210_v0  ;;  %892 = vmatprep.mubr.msk.bf16.mxu1 %vm1211_vm0, %v1210_v0  ;;  %v335_v6 = vpack.c.bf16 %v321_v5, %v320_v3  ;;  %v323_v8 = vld [vmem:[#allocation7 + $0x28] sm:$0xff]  ;;  %v324_v10 = vld [vmem:[#allocation7 + $0x30] sm:$0xff]  ;;  %v325_v11 = vld [vmem:[#allocation7 + $0x38] sm:$0xff]  ;;  %s676_s14 = sshll.u32 %s311_s11, 4  ;;  %s1565_s15 = scalar_lea.hbm %s1614_s5, %s818_s2  ;;  %s1560_s14 = int_to_ptr.vmem [resolvable:$true] %s676_s14 }
  0x94   : > { %851 = vmatpush3.bf16.msra.mxu0 %v334_v4  ;;  %v336_v9 = vpack.c.bf16 %v323_v8, %v322_v7  ;;  %v337_v12 = vpack.c.bf16 %v325_v11, %v324_v10  ;;  %v326_v13 = vld [vmem:[#allocation7 + $0x40] sm:$0xff]  ;;  %v327_v14 = vld [vmem:[#allocation7 + $0x48] sm:$0xff]  ;;  %v328_v16 = vld [vmem:[#allocation7 + $0x50] sm:$0xff]  ;;  %s663_s10 = scalar_lea.sflag [#allocation4], %s1466_s13  ;;  %s1124_s28 = scalar_lea.vmem %s1560_s14, 256 }
  0x95   : > { %852 = vmatprep.subr.bf16.mxu0 %v1210_v0  ;;  %v338_v15 = vpack.c.bf16 %v327_v14, %v326_v13  ;;  %v329_v17 = vld [vmem:[#allocation7 + $0x58] sm:$0xff]  ;;  %v330_v19 = vld [vmem:[#allocation7 + $0x60] sm:$0xff]  ;;  %v331_v20 = vld [vmem:[#allocation7 + $0x68] sm:$0xff]  ;;  %p1125_p1 = scmp.ne.s32.totalorder %s1560_s14, %s1124_s28  ;;  %p1640_p13 = scmp.ne.s32.totalorder %s1630_s23, 0 }
  0x96   : > { %v339_v18 = vpack.c.bf16 %v329_v17, %v328_v16  ;;  %v340_v21 = vpack.c.bf16 %v331_v20, %v330_v19  ;;  %v332_v22 = vld [vmem:[#allocation7 + $0x70] sm:$0xff]  ;;  %v333_v23 = vld [vmem:[#allocation7 + $0x78] sm:$0xff]  ;;  %v478_v28 = vld [vmem:[#allocation8] sm:$0xff]  ;;  %s1212_s22 = smov [#allocation10]  }
  0x97   : > { %v341_v24 = vpack.c.bf16 %v333_v23, %v332_v22  ;;  %v313_v25 = vld [vmem:[%s263_s30] sm:$0xff]  ;;  %v314_v26 = vld [vmem:[%s263_s30 + $0x8] sm:$0xff]  ;;  %p1126_p6 = pnand %p1125_p1, %p1640_p13  ;;  %s1128_s0 = sshll.u32 %s1212_s22, 4  ;;  %s1129_s0 = int_to_ptr.vmem [resolvable:$false] %s1128_s0 }
  0x98   : > { %853 = vmatpush3.bf16.msra.mxu0 %v335_v6  ;;  %v317_v27 = vpack.c.bf16 %v314_v26, %v313_v25  ;;  %v479_v29 = vld [vmem:[#allocation8 + $0x8] sm:$0xff]  ;;  %v480_v30 = vld [vmem:[#allocation8 + $0x10] sm:$0xff]  ;;  %v481_v32 = vld [vmem:[#allocation8 + $0x18] sm:$0xff]  ;;  %s1130_s6 = scalar_lea.vmem %s1129_s0, 512  ;;  %p1131_p4 = scmp.lt.s32.totalorder %s1560_s14, %s1129_s0 }
  0x99   : > { %854 = vmatprep.subr.bf16.mxu0 %v1210_v0  ;;  %v494_v31 = vpack.c.bf16 %v479_v29, %v478_v28  ;;  %v495_v33 = vpack.c.bf16 %v481_v32, %v480_v30  ;;  %v482_v34 = vld [vmem:[#allocation8 + $0x20] sm:$0xff]  ;;  %v483_v35 = vld [vmem:[#allocation8 + $0x28] sm:$0xff]  ;;  %v484_v37 = vld [vmem:[#allocation8 + $0x30] sm:$0xff]  ;;  %p1127_p10 = pneg %p1126_p6  ;;  %p1132_p5 = scmp.lt.s32.totalorder %s1130_s6, %s1124_s28 }
  0x9a   : > { %v496_v36 = vpack.c.bf16 %v483_v35, %v482_v34  ;;  %v485_v38 = vld [vmem:[#allocation8 + $0x38] sm:$0xff]  ;;  %v486_v40 = vld [vmem:[#allocation8 + $0x40] sm:$0xff]  ;;  %v487_v41 = vld [vmem:[#allocation8 + $0x48] sm:$0xff] }
  0x9b   : > { %877 = vmatpush3.bf16.msra.mxu1 %v494_v31  ;;  %v497_v39 = vpack.c.bf16 %v485_v38, %v484_v37  ;;  %v498_v42 = vpack.c.bf16 %v487_v41, %v486_v40  ;;  %v488_v43 = vld [vmem:[#allocation8 + $0x50] sm:$0xff]  ;;  %v489_v44 = vld [vmem:[#allocation8 + $0x58] sm:$0xff]  ;;  %v808_v46 = vld [vmem:[%s1612_s3] ss:$0 sm:$0xff]  ;;  %p1133_p3 = por %p1132_p5, %p1131_p4 }
  0x9c   : > { %855 = vmatpush3.bf16.msra.mxu0 %v336_v9  ;;  %878 = vmatprep.subr.bf16.mxu1 %v1210_v0  ;;  %v499_v45 = vpack.c.bf16 %v489_v44, %v488_v43  ;;  %v315_v14 = vld [vmem:[%s272_s9] sm:$0xff]  ;;  %v493_v30 = vld [vmem:[#allocation8 + $0x78] sm:$0xff] }
  0x9d   : > { %856 = vmatprep.subr.bf16.mxu0 %v1210_v0  ;;  %v426_v20 = vmul.f32 0.1, %v315_v14  ;;  %v490_v26 = vld [vmem:[#allocation8 + $0x60] sm:$0xff]  ;;  %v492_v29 = vld [vmem:[#allocation8 + $0x70] sm:$0xff]  ;;  %p1134_p7 = pnand %p1133_p3, %p1127_p10 }
  0x9e   : > { %v501_v31 = vpack.c.bf16 %v493_v30, %v492_v29  ;;  %v591_v41 = vld [vmem:[#allocation8 + $0x80] sm:$0xff]  ;;  %v593_v43 = vld [vmem:[#allocation8 + $0x90] sm:$0xff] }
  0x9f   : > { %879 = vmatpush3.bf16.msra.mxu1 %v495_v33 }
  0xa0   : > { %857 = vmatpush3.bf16.msra.mxu0 %v337_v12  ;;  %880 = vmatprep.subr.bf16.mxu1 %v1210_v0 }
  0xa1   : > { %858 = vmatprep.subr.bf16.mxu0 %v1210_v0 }
  0xa3   : > { %881 = vmatpush3.bf16.msra.mxu1 %v496_v36 }
  0xa4   : > { %859 = vmatpush3.bf16.msra.mxu0 %v338_v15  ;;  %882 = vmatprep.subr.bf16.mxu1 %v1210_v0  ;;  %v316_v15 = vld [vmem:[%s272_s9 + $0x8] sm:$0xff] }
  0xa5   : > { %860 = vmatprep.subr.bf16.mxu0 %v1210_v0 }
  0xa7   : > { %883 = vmatpush3.bf16.msra.mxu1 %v497_v39 }
  0xa8   : > { %861 = vmatpush3.bf16.msra.mxu0 %v339_v18  ;;  %884 = vmatprep.subr.bf16.mxu1 %v1210_v0 }
  0xa9   : > { %862 = vmatprep.subr.bf16.mxu0 %v1210_v0 }
  0xab   : > { %885 = vmatpush3.bf16.msra.mxu1 %v498_v42  ;;  %v592_v42 = vld [vmem:[#allocation8 + $0x88] sm:$0xff] }
  0xac   : > { %863 = vmatpush3.bf16.msra.mxu0 %v340_v21  ;;  %886 = vmatprep.subr.bf16.mxu1 %v1210_v0  ;;  %v427_v21 = vmul.f32 0.1, %v316_v15  ;;  %v607_v44 = vpack.c.bf16 %v592_v42, %v591_v41 }
  0xad   : > { %864 = vmatprep.subr.bf16.mxu0 %v1210_v0 }
  0xae   : > { %v1530_v25 = vpack.c.bf16 %v427_v21, %v426_v20 }
  0xaf   : > { %887 = vmatpush3.bf16.msra.mxu1 %v499_v45  ;;  %v594_v45 = vld [vmem:[#allocation8 + $0x98] sm:$0xff] }
  0xb0   : > { %865 = vmatpush3.bf16.msra.mxu0 %v341_v24  ;;  %888 = vmatprep.subr.bf16.mxu1 %v1210_v0 }
  0xb1   : > { %870 = vmatprep.subr.bf16.mxu0 %v1210_v0 }
  0xb3   : > { %867 = vmatmul.mubr.bf16.vlgmr.msra.gmra.mrb[0].mxu0 %v317_v27  ;;  %v491_v27 = vld [vmem:[#allocation8 + $0x68] sm:$0xff] }
  0xb4   : > { %872 = vmatprep.mubr.msk.bf16.mxu0 %vm1211_vm0, %v1210_v0  ;;  %v500_v28 = vpack.c.bf16 %v491_v27, %v490_v26 }
  0xb6   : > { %889 = vmatpush3.bf16.msra.mxu1 %v500_v28 }
  0xb7   : > { %890 = vmatprep.subr.bf16.mxu1 %v1210_v0 }
  0xba   : > { %891 = vmatpush3.bf16.msra.mxu1 %v501_v31 }
  0xbb   : > { %902 = vmatprep.subr.bf16.mxu1 %v1210_v0 }
 0x186   : > { %v383_v47 = vpop.f32.mrb[0].mxu0 }
 0x187   : > { %v384_v48 = vadd.f32 %v808_v46, %v383_v47  ;;  %v868_v49 = vpop.f32.mrb[1].mxu0  ;;  %v595_v47 = vld [vmem:[#allocation8 + $0xa0] sm:$0xff] }
 0x188   : > { %v386_v50 = vpop.f32.mrb[2].mxu0 }
 0x189   : > { %v396_v51 = vand.u32 2147483647, %v384_v48  ;;  %v387_v52 = vadd.f32 %v808_v46, %v386_v50  ;;  %v869_v53 = vpop.f32.mrb[3].mxu0  ;;  %v390_v10 = vmax.f32 %v384_v48, 0.0  ;;  %vm392_vm3 = vcmp.ne.f32.partialorder %v384_v48, %v384_v48  ;;  %v597_v50 = vld [vmem:[#allocation8 + $0xb0] sm:$0xff] }
 0x18a   : > { %v608_v46 = vpack.c.bf16 %v594_v45, %v593_v43  ;;  %v599_v53 = vld [vmem:[#allocation8 + $0xc0] sm:$0xff] }
 0x18b   : > { %v398_v54 = vsub.f32 0.0, %v396_v51  ;;  %v397_v55 = vand.u32 2147483647, %v387_v52  ;;  %v391_v17 = vmax.f32 %v387_v52, 0.0  ;;  %vm393_vm4 = vcmp.ne.f32.partialorder %v387_v52, %v387_v52  ;;  %v598_v51 = vld [vmem:[#allocation8 + $0xb8] sm:$0xff] }
 0x18d   : > { %v400_v56 = vmul.f32 1.442695, %v398_v54  ;;  %v399_v57 = vsub.f32 0.0, %v397_v55  ;;  %v600_v54 = vld [vmem:[#allocation8 + $0xc8] sm:$0xff] }
 0x18e   : > { %v611_v55 = vpack.c.bf16 %v600_v54, %v599_v53 }
 0x18f   : > { %1000 = vpow2.f32 %v400_v56  ;;  %v402_v58 = vmul.f32 1.442695, %v399_v57  ;;  %v601_v56 = vld [vmem:[#allocation8 + $0xd0] sm:$0xff]  ;;  %v602_v57 = vld [vmem:[#allocation8 + $0xd8] sm:$0xff] }
 0x191   : > { %1002 = vpow2.f32 %v402_v58  ;;  %v612_v58 = vpack.c.bf16 %v602_v57, %v601_v56 }
 0x199   : > { %v1001_v59 = vpop.eup %1000 }
 0x19a   : > { %v404_v60 = vadd.f32 1.0, %v1001_v59  ;;  %v407_v63 = vmul.f32 -0.5, %v1001_v59  ;;  %v410_v3 = vand.u32 2147483647, %v1001_v59 }
 0x19b   : > { %v1003_v61 = vpop.eup %1002 }
 0x19c   : > { %1004 = vlog2.f32 %v404_v60  ;;  %v413_v62 = vadd.f32 1.0, %v1003_v61  ;;  %v416_v1 = vmul.f32 -0.5, %v1003_v61  ;;  %v408_v2 = vadd.f32 1.0, %v407_v63 }
 0x19d   : > { %v419_v6 = vand.u32 2147483647, %v1003_v61  ;;  %vm411_vm1 = vcmp.lt.f32.partialorder %v410_v3, 0.0004427343 }
 0x19e   : > { %1006 = vlog2.f32 %v413_v62  ;;  %v417_v4 = vadd.f32 1.0, %v416_v1  ;;  %v409_v8 = vmul.f32 %v1001_v59, %v408_v2 }
 0x19f   : > { %vm420_vm2 = vcmp.lt.f32.partialorder %v419_v6, 0.0004427343  ;;  %v604_v6 = vld [vmem:[#allocation8 + $0xe8] sm:$0xff] }
 0x1a0   : > { %v418_v13 = vmul.f32 %v1003_v61, %v417_v4 }
 0x1a6   : > { %v1005_v5 = vpop.eup %1004 }
 0x1a7   : > { %v406_v7 = vmul.f32 0.6931472, %v1005_v5  ;;  %v603_v5 = vld [vmem:[#allocation8 + $0xe0] sm:$0xff] }
 0x1a8   : > { %v1007_v9 = vpop.eup %1006 }
 0x1a9   : > { %v412_v11 = vsel %vm411_vm1, %v409_v8, %v406_v7  ;;  %v415_v12 = vmul.f32 0.6931472, %v1007_v9  ;;  %v613_v7 = vpack.c.bf16 %v604_v6, %v603_v5  ;;  %v605_v8 = vld [vmem:[#allocation8 + $0xf0] sm:$0xff]  ;;  %v606_v9 = vld [vmem:[#allocation8 + $0xf8] sm:$0xff] }
 0x1aa   : > { %v422_v16 = vadd.f32 %v412_v11, %v390_v10  ;;  %v614_v10 = vpack.c.bf16 %v606_v9, %v605_v8 }
 0x1ab   : > { %v421_v18 = vsel %vm420_vm2, %v418_v13, %v415_v12 }
 0x1ac   : > { %v423_v19 = vadd.f32 %v421_v18, %v391_v17  ;;  %v1524_v22 = vsel %vm392_vm3, %v384_v48, %v422_v16  ;;  %v596_v48 = vld [vmem:[#allocation8 + $0xa8] sm:$0xff] }
 0x1ad   : > { %v1540_v33 = vmul.f32 0.9, %v1524_v22  ;;  %v609_v49 = vpack.c.bf16 %v596_v48, %v595_v47 }
 0x1ae   : > { %v1526_v23 = vsel %vm393_vm4, %v387_v52, %v423_v19  ;;  %v610_v52 = vpack.c.bf16 %v598_v51, %v597_v50 }
 0x1af   : > { %v431_v24 = vpack.c.bf16 %v1526_v23, %v1524_v22  ;;  %v430_v35 = vmul.f32 0.9, %v1526_v23 }
 0x1b1   : > { %871 = vmatpush3.bf16.msra.mxu0 %v431_v24 }
 0x1b2   : > { %896 = vmatprep.subr.bf16.mxu0 %v1210_v0 }
 0x1b4   : > { %873 = vmatmul.mubr.msk.bf16.vlgmr.msra.gmra.mrb[4].mxu0 %vm432_vm5, %v1530_v25 }
 0x1b5   : > { %898 = vmatprep.mubr.msk.bf16.mxu0 %vm1211_vm0, %v1210_v0 }
 0x287   : > { %v470_v32 = vpop.f32.mrb[4].mxu0 }
 0x288   : > { %v874_v34 = vpop.f32.mrb[5].mxu0  ;;  %v471_v37 = vadd.f32 %v470_v32, %v1540_v33 }
 0x289   : > { %v473_v36 = vpop.f32.mrb[6].mxu0 }
 0x28a   : > { %v474_v38 = vadd.f32 %v473_v36, %v430_v35  ;;  %v875_v39 = vpop.f32.mrb[7].mxu0 }
 0x28c   : > { %v477_v40 = vpack.c.bf16 %v474_v38, %v471_v37 }
 0x28e   : > { %893 = vmatmul.mubr.bf16.vlgmr.msra.gmra.mrb[0].mxu1 %v477_v40 }
 0x28f   : > { %918 = vmatprep.mubr.msk.bf16.mxu1 %vm1211_vm0, %v1210_v0  ;;  %903 = vmatpush3.bf16.msra.mxu1 %v607_v44 }
 0x290   : > { %904 = vmatprep.subr.bf16.mxu1 %v1210_v0 }
 0x293   : > { %905 = vmatpush3.bf16.msra.mxu1 %v608_v46 }
 0x294   : > { %906 = vmatprep.subr.bf16.mxu1 %v1210_v0 }
 0x297   : > { %907 = vmatpush3.bf16.msra.mxu1 %v609_v49 }
 0x298   : > { %908 = vmatprep.subr.bf16.mxu1 %v1210_v0 }
 0x29b   : > { %909 = vmatpush3.bf16.msra.mxu1 %v610_v52 }
 0x29c   : > { %910 = vmatprep.subr.bf16.mxu1 %v1210_v0 }
 0x29f   : > { %911 = vmatpush3.bf16.msra.mxu1 %v611_v55 }
 0x2a0   : > { %912 = vmatprep.subr.bf16.mxu1 %v1210_v0 }
 0x2a3   : > { %913 = vmatpush3.bf16.msra.mxu1 %v612_v58 }
 0x2a4   : > { %914 = vmatprep.subr.bf16.mxu1 %v1210_v0 }
 0x2a7   : > { %915 = vmatpush3.bf16.msra.mxu1 %v613_v7 }
 0x2a8   : > { %916 = vmatprep.subr.bf16.mxu1 %v1210_v0 }
 0x2ab   : > { %917 = vmatpush3.bf16.msra.mxu1 %v614_v10 }
 0x361   : > { %v536_v59 = vpop.f32.mrb[0].mxu1 }
 0x362   : > { %v543_v60 = vmax.f32 %v536_v59, 0.0  ;;  %v894_v61 = vpop.f32.mrb[1].mxu1 }
 0x363   : > { %v539_v62 = vpop.f32.mrb[2].mxu1 }
 0x364   : > { %v544_v63 = vmax.f32 %v539_v62, 0.0  ;;  %v895_v1 = vpop.f32.mrb[3].mxu1  ;;  %v545_v2 = vadd.f32 %v543_v60, %v1524_v22 }
 0x366   : > { %v546_v3 = vadd.f32 %v544_v63, %v1526_v23 }
 0x368   : > { %v547_v4 = vpack.c.bf16 %v546_v3, %v545_v2 }
 0x36a   : > { %897 = vmatpush3.bf16.msra.mxu0 %v547_v4 }
 0x36d   : > { %899 = vmatmul.mubr.msk.bf16.vlgmr.msra.gmra.mrb[8].mxu0 %vm432_vm5, %v1530_v25 }
 0x440   : > { %v582_v11 = vpop.f32.mrb[8].mxu0 }
 0x441   : > { %v900_v12 = vpop.f32.mrb[9].mxu0  ;;  %v583_v14 = vadd.f32 %v582_v11, %v1540_v33 }
 0x442   : > { %v585_v13 = vpop.f32.mrb[10].mxu0 }
 0x443   : > { %v586_v15 = vadd.f32 %v585_v13, %v430_v35  ;;  %v901_v16 = vpop.f32.mrb[11].mxu0 }
 0x445   : > { %v589_v17 = vpack.c.bf16 %v586_v15, %v583_v14 }
 0x447   : > { %919 = vmatmul.mubr.bf16.vlgmr.msra.gmra.mrb[4].mxu1 %v589_v17 }
 0x51a   : > { %v649_v18 = vpop.f32.mrb[4].mxu1 }
 0x51b   : > { %v656_v0 = vmax.f32 %v649_v18, 0.0  ;;  %v920_v19 = vpop.f32.mrb[5].mxu1 }
 0x51c   : > { %v652_v20 = vpop.f32.mrb[6].mxu1 }
 0x51d   : > { %v658_v21 = vadd.f32 %v656_v0, %v545_v2  ;;  %v657_v22 = vmax.f32 %v652_v20, 0.0  ;;  %v921_v23 = vpop.f32.mrb[7].mxu1 }
 0x51f   : > { %660 = vst [vmem:[%s311_s11] sm:$0xff] %v658_v21  ;;  %v659_v24 = vadd.f32 %v657_v22, %v546_v3 }
 0x521   : > { %661 = vst [vmem:[%s311_s11 + $0x8] sm:$0xff] %v659_v24 }
 0x522   : > { %1137 = shalt.err (!%p1134_p7)
}
 0x523   : > { %s1138_s12 = scalar_lea.hbm %s1565_s15, 256  ;;  %s1142_s17 = scalar_lea.hbm %s1614_s5, 512 }
 0x524   : > { %p1139_p9 = scmp.ne.s32.totalorder %s1565_s15, %s1138_s12  ;;  %p1143_p11 = scmp.lt.u32.totalorder %s1565_s15, %s1614_s5 }
 0x525   : > { %p1144_p2 = scmp.lt.u32.totalorder %s1142_s17, %s1138_s12  ;;  %p1146_p1 = scmp.lt.u32.totalorder %s1138_s12, %s1565_s15 }
 0x526   : > { %p1140_p0 = pnand %p1139_p9, %p1640_p13 }
 0x527   : > { %p1145_p12 = por %p1144_p2, %p1143_p11 }
 0x528   : > { %p1141_p8 = pneg %p1140_p0 }
 0x529   : > { %p1147_p6 = por %p1146_p1, %p1145_p12 }
 0x52b   : > { %p1148_p10 = pnand %p1147_p6, %p1141_p8 }
 0x52d   : > { %1151 = shalt.err (!%p1148_p10)
}
 0x52e   : > { %s1213_s8 = smov 128   ;;  %s1214_s11 = smov 8  }
 0x52f   : > { %934 = dma.vmem_to_hbm [thread:$0]  (%p1640_p13), %s1560_s14, 256, %s1565_s15, %s663_s10, %s1213_s8, %s1213_s8, %s1214_s11  }
 0x530 PF: > { %s691_s2 = sand.u32 1, %s1190_s18   ;;  %p1641_p4 = scmp.ne.s32.totalorder %s1625_s25, 0 }
 0x531   : > { %p1642_p5 = scmp.ge.s32.totalorder %s1202_s21, 2  ;;  %s692_s16 = scalar_lea.sflag [#allocation4], %s691_s2 }
 0x533   : > { %p951_p3 = pnand %p1642_p5, %p1641_p4 }
 0x535   : > { %1185 = dma.done.wait (!%p951_p3), %s692_s16, 256  }
 0x536   : > { %1187 = vsyncadd (!%p951_p3), %s692_s16, 4294967040  ;;  %p22_p7 = scmp.ge.s32.totalorder %s1361_s29, 4   ;;  %s1643_s18 = smov %s1194_s19 }
 0x537   : > { %s1644_s19 = smov %s1198_s20  ;;  %s1645_s20 = smov %s1377_s27 }
 0x538   : > { %s1646_s21 = smov %s1361_s29  ;;  %24 = sbr.rel (!%p22_p7) target bundleno = 11 (0xb), region = 107 }
 0x53f   :  { %697 = vsyncpa [#allocation3], 1 }
 0x540   :  { %699 = vsyncpa [#allocation3 + $0x1], 1 }
 0x541   :  { %700 = vsyncpa [#allocation6], 1 }
 0x542   :  { %702 = vsyncpa [#allocation6 + $0x1], 1 }
 0x543   :  { %703 = vsyncpa [#allocation9], 1 }
 0x544   :  { %704 = vsyncpa [#allocation4], 1 }
 0x545   :  { %706 = vsyncpa [#allocation4 + $0x1], 1 }

</bundles_post_ra>
